<compile_context>
chip_gen: v5e
topology: v5e:2x2
jax: 0.10.0
libtpu: 0.0.40
codegen_flags: <defaults>
</compile_context>

<pallas_src>
import math
import functools

import jax
import jax.numpy as jnp
from jax.experimental import pallas as pl
from jax.experimental.pallas import tpu as pltpu


# ---------------------------------------------------------------------------
# Kernels
# ---------------------------------------------------------------------------

def _sdpa_kernel(q_ref, k_ref, v_ref, attn_ref, out_ref, *, inv_scale):
    """No-mask variant. Blocks: q (Bt,tq,Dk), k (Bt,Lk,Dk), v (Bt,Lk,Dv)."""
    q = q_ref[...] * inv_scale          # fold 1/scale into the smaller operand
    k = k_ref[...]
    v = v_ref[...]

    # Scores: contraction over Dk, native dtype operands, f32 accumulation.
    s = jnp.einsum("bqd,bkd->bqk", q, k, preferred_element_type=jnp.float32)

    # Softmax over the last axis.
    s_max = jnp.max(s, axis=-1, keepdims=True)
    e = jnp.exp(s - s_max)
    denom = jnp.sum(e, axis=-1, keepdims=True)
    attn = e * pl.reciprocal(denom)     # exact reciprocal; avoids vector divide
    attn_ref[...] = attn.astype(attn_ref.dtype)

    # Second matmul: probabilities in v's dtype, f32 accumulation.
    out = jnp.einsum("bqk,bkd->bqd", attn.astype(v.dtype), v,
                     preferred_element_type=jnp.float32)
    out_ref[...] = out.astype(out_ref.dtype)


def _sdpa_kernel_masked(q_ref, k_ref, v_ref, mask_ref, attn_ref, out_ref, *,
                        inv_scale):
    """Masked variant. mask block (Bt,tq,Lk) int8; nonzero => fill with -inf."""
    q = q_ref[...] * inv_scale
    k = k_ref[...]
    v = v_ref[...]
    m = mask_ref[...]

    s = jnp.einsum("bqd,bkd->bqk", q, k, preferred_element_type=jnp.float32)
    # masked_fill(mask, -inf) — matches torch semantics (fully-masked rows → NaN,
    # same as masked_fill(-inf)+softmax in the reference module).
    s = jnp.where(m != 0, -jnp.inf, s)

    s_max = jnp.max(s, axis=-1, keepdims=True)
    e = jnp.exp(s - s_max)
    denom = jnp.sum(e, axis=-1, keepdims=True)
    attn = e * pl.reciprocal(denom)
    attn_ref[...] = attn.astype(attn_ref.dtype)

    out = jnp.einsum("bqk,bkd->bqd", attn.astype(v.dtype), v,
                     preferred_element_type=jnp.float32)
    out_ref[...] = out.astype(out_ref.dtype)


# ---------------------------------------------------------------------------
# Tiling heuristics
# ---------------------------------------------------------------------------

_VMEM_LIMIT_BYTES = 48 * 1024 * 1024      # safe on v5e/v6e (128 MiB) and v7x (64 MiB)
_VMEM_TILE_BUDGET = 28 * 1024 * 1024      # what the tile heuristic may consume


def _choose_tiles(B, Lq, Lk, Dk, Dv, itemsize, has_mask,
                  vmem_budget=_VMEM_TILE_BUDGET):
    """Pick (batch_tile, q_tile) so the double-buffered blocks fit in VMEM.

    Prefers the biggest blocks that fit (amortizes ~0.35us/step overhead and
    keeps stores lane-dense); shrinks the batch tile first, then tiles Lq.
    """
    def footprint(bt, tq):
        in_bytes = bt * (tq * Dk + Lk * Dk + Lk * Dv) * itemsize
        if has_mask:
            in_bytes += bt * tq * Lk  # int8 mask
        out_bytes = bt * tq * Lk * 4 + bt * tq * Dv * itemsize
        # 2x for double buffering + f32 intermediates (scores / exp / attn).
        return 2 * (in_bytes + out_bytes) + 3 * bt * tq * Lk * 4

    # tq must be Lq itself or an (8-multiple) divisor of Lq (sublane alignment).
    tq_candidates = [Lq] + [t for t in range(Lq - (Lq % 8 or 8), 7, -8)
                            if Lq % t == 0]
    bt_candidates = [b for b in range(B, 0, -1) if B % b == 0]

    for tq in tq_candidates:
        for bt in bt_candidates:
            if footprint(bt, tq) <= vmem_budget:
                return bt, tq
    # TODO(synk): very long Lk would also need Lk tiling + online softmax, but
    # the module materializes the full attn matrix, so K stays resident here.
    return 1, tq_candidates[-1]


# ---------------------------------------------------------------------------
# Wrapper
# ---------------------------------------------------------------------------

def scaled_dot_product_attention(q, k, v, scale, mask=None):
    """Pallas equivalent of ScaledDotProductAttention.forward.

    q: (B, Lq, Dk), k: (B, Lk, Dk), v: (B, Lk, Dv)
    mask: optional boolean/int (B, Lq, Lk); True/nonzero positions get -inf.
    Returns (attn, output) with shapes (B, Lq, Lk) f32 and (B, Lq, Dv) q.dtype.
    """
    B, Lq, Dk = q.shape
    Bk, Lk, Dk2 = k.shape
    Bv, Lkv, Dv = v.shape
    assert Dk == Dk2 and Bk == B and Bv == B and Lkv == Lk

    has_mask = mask is not None
    itemsize = jnp.dtype(q.dtype).itemsize
    bt, tq = _choose_tiles(B, Lq, Lk, Dk, Dv, itemsize, has_mask)
    grid = (B // bt, Lq // tq)
    inv_scale = 1.0 / float(scale)

    in_specs = [
        pl.BlockSpec((bt, tq, Dk), lambda b, i: (b, i, 0)),
        pl.BlockSpec((bt, Lk, Dk), lambda b, i: (b, 0, 0)),
        pl.BlockSpec((bt, Lk, Dv), lambda b, i: (b, 0, 0)),
    ]
    operands = [q, k, v]

    if has_mask:
        in_specs.append(pl.BlockSpec((bt, tq, Lk), lambda b, i: (b, i, 0)))
        operands.append(mask.astype(jnp.int8))
        kernel = functools.partial(_sdpa_kernel_masked, inv_scale=inv_scale)
    else:
        kernel = functools.partial(_sdpa_kernel, inv_scale=inv_scale)

    out_specs = [
        pl.BlockSpec((bt, tq, Lk), lambda b, i: (b, i, 0)),
        pl.BlockSpec((bt, tq, Dv), lambda b, i: (b, i, 0)),
    ]

    attn, out = pl.pallas_call(
        kernel,
        out_shape=(
            jax.ShapeDtypeStruct((B, Lq, Lk), jnp.float32),
            jax.ShapeDtypeStruct((B, Lq, Dv), q.dtype),
        ),
        grid_spec=pltpu.PrefetchScalarGridSpec(
            num_scalar_prefetch=0,
            grid=grid,
            in_specs=in_specs,
            out_specs=out_specs,
        ),
        compiler_params=pltpu.CompilerParams(
            dimension_semantics=("parallel", "parallel"),
            vmem_limit_bytes=_VMEM_LIMIT_BYTES,
        ),
    )(*operands)
    return attn, out


# ---------------------------------------------------------------------------
# Reference + self-test
# ---------------------------------------------------------------------------

def _reference(q, k, v, scale, mask=None):
    u = jnp.einsum("bqd,bkd->bqk", q, k,
                   precision=jax.lax.Precision.HIGHEST) / scale
    if mask is not None:
        u = jnp.where(mask, -jnp.inf, u)
    attn = jax.nn.softmax(u, axis=2)
    out = jnp.einsum("bqk,bkd->bqd", attn, v,
                     precision=jax.lax.Precision.HIGHEST)
    return attn, out


if __name__ == "__main__":
    key = jax.random.PRNGKey(0)
    kq, kk, kv = jax.random.split(key, 3)

    # --- small shapes matching the module's defaults ---
    B, Lq, Lk, Dk, Dv = 2, 8, 8, 32, 32
    scale = math.sqrt(Dk)

    q = jax.random.normal(kq, (B, Lq, Dk), dtype=jnp.float32)
    k = jax.random.normal(kk, (B, Lk, Dk), dtype=jnp.float32)
    v = jax.random.normal(kv, (B, Lk, Dv), dtype=jnp.float32)

    # no-mask path (specialized kernel: no mask DMA at all)
    attn, out = scaled_dot_product_attention(q, k, v, scale, mask=None)
    jax.block_until_ready((attn, out))
    attn_ref, out_ref = _reference(q, k, v, scale, mask=None)
    assert jnp.allclose(attn, attn_ref, atol=1e-5, rtol=1e-5)
    assert jnp.allclose(out, out_ref, atol=1e-5, rtol=1e-5)

    # masked path (causal mask; no row is fully masked)
    causal = jnp.triu(jnp.ones((Lq, Lk), dtype=bool), k=1)
    mask = jnp.broadcast_to(causal, (B, Lq, Lk))
    attn_m, out_m = scaled_dot_product_attention(q, k, v, scale, mask=mask)
    jax.block_until_ready((attn_m, out_m))
    attn_mr, out_mr = _reference(q, k, v, scale, mask=mask)
    assert jnp.allclose(attn_m, attn_mr, atol=1e-5, rtol=1e-5)
    assert jnp.allclose(out_m, out_mr, atol=1e-5, rtol=1e-5)

    # medium shapes: exercises the tiling heuristic + lane-dense attn stores
    B2, Lq2, Lk2, Dk2_, Dv2 = 2, 128, 256, 64, 64
    scale2 = math.sqrt(Dk2_)
    kq2, kk2, kv2 = jax.random.split(jax.random.PRNGKey(1), 3)
    q2 = jax.random.normal(kq2, (B2, Lq2, Dk2_), dtype=jnp.float32)
    k2 = jax.random.normal(kk2, (B2, Lk2, Dk2_), dtype=jnp.float32)
    v2 = jax.random.normal(kv2, (B2, Lk2, Dv2), dtype=jnp.float32)
    attn2, out2 = scaled_dot_product_attention(q2, k2, v2, scale2, mask=None)
    jax.block_until_ready((attn2, out2))
    attn2_ref, out2_ref = _reference(q2, k2, v2, scale2, mask=None)
    assert jnp.allclose(attn2, attn2_ref, atol=1e-3, rtol=1e-3)
    assert jnp.allclose(out2, out2_ref, atol=1e-3, rtol=1e-3)

    print("KERNEL_OK")
</pallas_src>

<mosaic_0001>
module attributes {stable_mosaic.version = 11 : i64} {
  func.func @_sdpa_kernel(%arg0: i32, %arg1: i32, %arg2: memref<2x8x32xf32, #tpu.memory_space<vmem>>, %arg3: memref<2x8x32xf32, #tpu.memory_space<vmem>>, %arg4: memref<2x8x32xf32, #tpu.memory_space<vmem>>, %arg5: memref<2x8x8xf32, #tpu.memory_space<vmem>>, %arg6: memref<2x8x32xf32, #tpu.memory_space<vmem>>) attributes {dimension_semantics = [#tpu.dimension_semantics<parallel>, #tpu.dimension_semantics<parallel>], iteration_bounds = array<i64: 1, 1>, scalar_prefetch = 0 : i64, scratch_operands = 0 : i64, tpu.core_type = #tpu.core_type<tc>, window_params = [{transform_indices = @transform_0, window_bounds = array<i64: 2, 8, 32>}, {transform_indices = @transform_1, window_bounds = array<i64: 2, 8, 32>}, {transform_indices = @transform_2, window_bounds = array<i64: 2, 8, 32>}, {transform_indices = @transform_3, window_bounds = array<i64: 2, 8, 8>}, {transform_indices = @transform_4, window_bounds = array<i64: 2, 8, 32>}]} {
    %c0 = arith.constant 0 : index
    %c0_0 = arith.constant 0 : index
    %c0_1 = arith.constant 0 : index
    %0 = vector.load %arg2[%c0, %c0_0, %c0_1] : memref<2x8x32xf32, #tpu.memory_space<vmem>>, vector<2x8x32xf32>
    %cst = arith.constant 0.176776692 : f32
    %1 = vector.broadcast %cst : f32 to vector<2x8x32xf32>
    %2 = arith.mulf %0, %1 : vector<2x8x32xf32>
    %c0_2 = arith.constant 0 : index
    %c0_3 = arith.constant 0 : index
    %c0_4 = arith.constant 0 : index
    %3 = vector.load %arg3[%c0_2, %c0_3, %c0_4] : memref<2x8x32xf32, #tpu.memory_space<vmem>>, vector<2x8x32xf32>
    %c0_5 = arith.constant 0 : index
    %c0_6 = arith.constant 0 : index
    %c0_7 = arith.constant 0 : index
    %4 = vector.load %arg4[%c0_5, %c0_6, %c0_7] : memref<2x8x32xf32, #tpu.memory_space<vmem>>, vector<2x8x32xf32>
    "tpu.trace_start"() <{level = 10 : i32, message = "bqd,bkd->bqk"}> : () -> ()
    %cst_8 = arith.constant dense<0.000000e+00> : vector<2x8x8xf32>
    %5 = tpu.matmul %2, %3, %cst_8 {dimension_numbers = #tpu.dot_dimension_numbers<[2], [2], [1], [1], [0, 0, 0, 1, 1, 1], [0], [0]>} : vector<2x8x32xf32>, vector<2x8x32xf32>, vector<2x8x8xf32> -> vector<2x8x8xf32>
    "tpu.trace_stop"() : () -> ()
    %cst_9 = arith.constant dense<0xFF800000> : vector<2x8xf32>
    %6 = vector.multi_reduction <maximumf>, %5, %cst_9 [2] : vector<2x8x8xf32> to vector<2x8xf32>
    %7 = vector.shape_cast %6 : vector<2x8xf32> to vector<2x8x1xf32>
    %8 = vector.broadcast %7 : vector<2x8x1xf32> to vector<2x8x8xf32>
    %9 = arith.subf %5, %8 : vector<2x8x8xf32>
    %10 = math.exp %9 : vector<2x8x8xf32>
    %cst_10 = arith.constant dense<0.000000e+00> : vector<2x8xf32>
    %11 = vector.multi_reduction <add>, %10, %cst_10 [2] : vector<2x8x8xf32> to vector<2x8xf32>
    %12 = vector.shape_cast %11 : vector<2x8xf32> to vector<2x8x1xf32>
    %13 = tpu.reciprocal %12 : vector<2x8x1xf32> -> vector<2x8x1xf32>
    %14 = vector.broadcast %13 : vector<2x8x1xf32> to vector<2x8x8xf32>
    %15 = arith.mulf %10, %14 : vector<2x8x8xf32>
    %c0_11 = arith.constant 0 : index
    %c0_12 = arith.constant 0 : index
    %c0_13 = arith.constant 0 : index
    %16 = vector.load %arg5[%c0_11, %c0_12, %c0_13] : memref<2x8x8xf32, #tpu.memory_space<vmem>>, vector<2x8x8xf32>
    tpu.vector_store %arg5[%c0_11, %c0_12, %c0_13], %15 {strides = array<i32>} : memref<2x8x8xf32, #tpu.memory_space<vmem>>, vector<2x8x8xf32>,
    "tpu.trace_start"() <{level = 10 : i32, message = "bqk,bkd->bqd"}> : () -> ()
    %cst_14 = arith.constant dense<0.000000e+00> : vector<2x8x32xf32>
    %17 = tpu.matmul %15, %4, %cst_14 {dimension_numbers = #tpu.dot_dimension_numbers<[2], [1], [1], [2], [0, 0, 0, 1, 1, 2], [0], [0]>} : vector<2x8x8xf32>, vector<2x8x32xf32>, vector<2x8x32xf32> -> vector<2x8x32xf32>
    "tpu.trace_stop"() : () -> ()
    %c0_15 = arith.constant 0 : index
    %c0_16 = arith.constant 0 : index
    %c0_17 = arith.constant 0 : index
    %18 = vector.load %arg6[%c0_15, %c0_16, %c0_17] : memref<2x8x32xf32, #tpu.memory_space<vmem>>, vector<2x8x32xf32>
    tpu.vector_store %arg6[%c0_15, %c0_16, %c0_17], %17 {strides = array<i32>} : memref<2x8x32xf32, #tpu.memory_space<vmem>>, vector<2x8x32xf32>,
    return
  }
  func.func @transform_0(%arg0: i32, %arg1: i32) -> (i32, i32, i32) {
    %c0_i32 = arith.constant 0 : i32
    %c0_i32_0 = arith.constant 0 : i32
    return %arg0, %arg1, %c0_i32 : i32, i32, i32
  }
  func.func @transform_1(%arg0: i32, %arg1: i32) -> (i32, i32, i32) {
    %c0_i32 = arith.constant 0 : i32
    %c0_i32_0 = arith.constant 0 : i32
    %c0_i32_1 = arith.constant 0 : i32
    return %arg0, %c0_i32, %c0_i32_0 : i32, i32, i32
  }
  func.func @transform_2(%arg0: i32, %arg1: i32) -> (i32, i32, i32) {
    %c0_i32 = arith.constant 0 : i32
    %c0_i32_0 = arith.constant 0 : i32
    %c0_i32_1 = arith.constant 0 : i32
    return %arg0, %c0_i32, %c0_i32_0 : i32, i32, i32
  }
  func.func @transform_3(%arg0: i32, %arg1: i32) -> (i32, i32, i32) {
    %c0_i32 = arith.constant 0 : i32
    %c0_i32_0 = arith.constant 0 : i32
    return %arg0, %arg1, %c0_i32 : i32, i32, i32
  }
  func.func @transform_4(%arg0: i32, %arg1: i32) -> (i32, i32, i32) {
    %c0_i32 = arith.constant 0 : i32
    %c0_i32_0 = arith.constant 0 : i32
    return %arg0, %arg1, %c0_i32 : i32, i32, i32
  }
}

</mosaic_0001>

<bundles_post_ra>
// kernel: tpu_custom_call.1
= control target key start
LH: loop header
LB: loop body
LE: loop exit
PB: predicated region body
PF: predicated region fallthrough
CT: control target
= control target key end

     0   :  { %10 = vsyncpa [#allocation3], 0  ;;  %s488_s0 = inlined_call_operand.hbm [shape: f32[2,8,32], index: 0, kind: input, shape index: {}]   ;;  %s489_s1 = inlined_call_operand.hbm [shape: f32[2,8,32], index: 1, kind: input, shape index: {}]   ;;  %s490_s2 = inlined_call_operand.hbm [shape: f32[2,8,32], index: 2, kind: input, shape index: {}]   ;;  %s491_s3 = inlined_call_operand.hbm [shape: f32[2,8,8], index: 3, kind: output, shape index: {0}]   ;;  %s492_s4 = inlined_call_operand.hbm [shape: f32[2,8,32], index: 4, kind: output, shape index: {1}]  }
   0x1   :  { %11 = vsyncpa [#allocation6], 0 }
   0x2   :  { %12 = vsyncpa [#allocation4], 0 }
   0x3   :  { %13 = vsyncpa [#allocation10], 0  ;;  %s31_s17 = sshll.u32 %s489_s1, 4  ;;  %s412_s18 = smov [#allocation5]   ;;  %s32_s17 = int_to_ptr.hbm [resolvable:$true] %s31_s17 }
   0x4   :  { %s33_s19 = sshll.u32 %s412_s18, 4  ;;  %s18_s22 = sshll.u32 %s488_s0, 4  ;;  %s34_s19 = int_to_ptr.vmem [resolvable:$true] %s33_s19  ;;  %s19_s22 = int_to_ptr.hbm [resolvable:$true] %s18_s22 }
   0x5   :  { %s413_s23 = smov 128   ;;  %s414_s24 = smov 8  }
   0x6   :  { %39 = dma.hbm_to_vmem [thread:$0]  %s32_s17, 256, %s34_s19, [#allocation6], %s413_s23, %s413_s23, %s414_s24  }
   0x7   :  { %s415_s25 = smov [#allocation2]   ;;  %s44_s1 = sshll.u32 %s490_s2, 4  ;;  %s45_s1 = int_to_ptr.hbm [resolvable:$true] %s44_s1 }
   0x8   :  { %s20_s26 = sshll.u32 %s415_s25, 4  ;;  %s416_s0 = smov [#allocation7]   ;;  %s21_s26 = int_to_ptr.vmem [resolvable:$true] %s20_s26 }
   0x9   :  { %26 = dma.hbm_to_vmem [thread:$0]  %s19_s22, 256, %s21_s26, [#allocation3], %s413_s23, %s413_s23, %s414_s24  }
   0xa   :  { %s46_s29 = sshll.u32 %s416_s0, 4  ;;  %s47_s29 = int_to_ptr.vmem [resolvable:$true] %s46_s29 }
   0xb   :  { %52 = dma.hbm_to_vmem [thread:$0]  %s45_s1, 256, %s47_s29, [#allocation6], %s413_s23, %s413_s23, %s414_s24  }
   0xc   :  { %404 = dma.done.wait [#allocation3], 256  }
   0xd   :  { %405 = vsyncadd [#allocation3], 4294967040 }
   0xe   :  { %406 = dma.done.wait [#allocation6], 512  }
   0xf   :  { %407 = vsyncadd [#allocation6], 4294966784  ;;  %vm73_vm0 = vcmask 261120   ;;  %v69_v0 = vld [vmem:[#allocation5] sm:$0xff]  ;;  %v65_v1 = vld [vmem:[#allocation2] sm:$0xff]  ;;  %vm126_vm1 = vcmask 64512  }
  0x10   :  { %v70_v2 = vld [vmem:[#allocation5 + $0x8] sm:$0xff]  ;;  %263 = vmatpush.xpose.msk.msra.mxu0 %vm73_vm0, %v69_v0  ;;  %v67_v3 = vmul.f32 0.17677669, %v65_v1  ;;  %v66_v4 = vld [vmem:[#allocation2 + $0x8] sm:$0xff]  ;;  %v71_v20 = vld [vmem:[#allocation7] sm:$0xff]  ;;  %s417_s2 = smov [#allocation8]  }
  0x11   :  { %265 = vmatpush.xpose.msk.msra.mxu1 %vm73_vm0, %v70_v2  ;;  %v68_v5 = vmul.f32 0.17677669, %v66_v4  ;;  %195 = vmatpush.msra.mxu2 %v71_v20  ;;  %v72_v21 = vld [vmem:[#allocation7 + $0x8] sm:$0xff]  ;;  %s229_s30 = sshll.u32 %s417_s2, 4  ;;  %s231_s7 = sshll.u32 %s491_s3, 4  ;;  %s230_s30 = int_to_ptr.vmem [resolvable:$true] %s229_s30  ;;  %s232_s7 = int_to_ptr.hbm [resolvable:$true] %s231_s7 }
  0x12   :  { %218 = vmatpush.msra.mxu3 %v72_v21  ;;  %s418_s8 = smov [#allocation9]   ;;  %s244_s12 = sshll.u32 %s492_s4, 4  ;;  %s245_s12 = int_to_ptr.hbm [resolvable:$true] %s244_s12 }
  0x13   :  { %264 = vmatmul.msk.f32.vlgmr.msra.gmra.mxu0 %vm73_vm0, %v67_v3  ;;  %s242_s9 = sshll.u32 %s418_s8, 4  ;;  %s243_s9 = int_to_ptr.vmem [resolvable:$true] %s242_s9 }
  0x14   :  { %266 = vmatmul.msk.f32.vlgmr.msra.gmra.mxu1 %vm73_vm0, %v68_v5 }
  0x90   :  { %v97_v6 = vpop.f32.mrf.mxu0 }
  0x91   :  { %v127_v7 = vsel %vm126_vm1, %v97_v6, -inf  ;;  %v123_v8 = vpop.f32.mrf.mxu1 }
  0x92   :  { %128 = vmax.xlane.f32.xlu0 %v127_v7  ;;  %v130_v9 = vsel %vm126_vm1, %v123_v8, -inf }
  0x9a   :  { %131 = vmax.xlane.f32.xlu0 %v130_v9 }
 0x105   :  { %v129_v10 = vpop.xlane.xlu0 %128 }
 0x106   :  { %v133_v11 = vsub.f32 %v97_v6, %v129_v10 }
 0x108   :  { %v135_v12 = vmul.f32 1.442695, %v133_v11 }
 0x10a   :  { %276 = vpow2.f32 %v135_v12 }
 0x10d   :  { %v132_v13 = vpop.xlane.xlu0 %131 }
 0x10e   :  { %v134_v14 = vsub.f32 %v123_v8, %v132_v13 }
 0x110   :  { %v277_v15 = vpop.eup %276  ;;  %v137_v16 = vmul.f32 1.442695, %v134_v14 }
 0x111   :  { %v139_v17 = vsel %vm126_vm1, %v277_v15, 0.0 }
 0x112   :  { %278 = vpow2.f32 %v137_v16  ;;  %140 = vadd.xlane.f32.xlu1 %v139_v17 }
 0x118   :  { %v279_v18 = vpop.eup %278 }
 0x119   :  { %v142_v19 = vsel %vm126_vm1, %v279_v18, 0.0 }
 0x11a   :  { %143 = vadd.xlane.f32.xlu1 %v142_v19 }
 0x185   :  { %v141_v22 = vpop.xlane.xlu1 %140 }
 0x186   :  { %280 = vrcp.f32 %v141_v22  ;;  %v156_v27 = vand.u32 2147483648, %v141_v22  ;;  %v154_v29 = vand.u32 2147483647, %v141_v22  ;;  %vm150_vm3 = vweird.f32 %v141_v22 }
 0x188   :  { %v157_v32 = vor.u32 1.1754944e-38, %v156_v27  ;;  %vm155_vm5 = vcmp.eq.f32.partialorder %v154_v29, 8.507059e+37 }
 0x18c   :  { %v281_v23 = vpop.eup %280 }
 0x18d   :  { %v146_v24 = vmul.f32 %v281_v23, %v141_v22  ;;  %v144_v25 = vpop.xlane.xlu1 %143  ;;  %vm151_vm2 = vweird.f32 %v281_v23 }
 0x18e   :  { %282 = vrcp.f32 %v144_v25  ;;  %vm152_vm4 = vmor %vm150_vm3, %vm151_vm2  ;;  %v170_v38 = vand.u32 2147483648, %v144_v25  ;;  %v168_v40 = vand.u32 2147483647, %v144_v25  ;;  %vm164_vm7 = vweird.f32 %v144_v25 }
 0x18f   :  { %v147_v26 = vsub.f32 1.0, %v146_v24 }
 0x190   :  { %v171_v42 = vor.u32 1.1754944e-38, %v170_v38  ;;  %vm169_vm9 = vcmp.eq.f32.partialorder %v168_v40, 8.507059e+37 }
 0x191   :  { %v148_v28 = vmul.f32 %v281_v23, %v147_v26 }
 0x193   :  { %v149_v30 = vadd.f32 %v281_v23, %v148_v28 }
 0x194   :  { %v283_v31 = vpop.eup %282 }
 0x195   :  { %v160_v33 = vmul.f32 %v283_v31, %v144_v25  ;;  %v153_v34 = vsel %vm152_vm4, %v281_v23, %v149_v30  ;;  %vm165_vm6 = vweird.f32 %v283_v31 }
 0x196   :  { %v158_v35 = vsel %vm155_vm5, %v157_v32, %v153_v34  ;;  %vm166_vm8 = vmor %vm164_vm7, %vm165_vm6 }
 0x197   :  { %v161_v36 = vsub.f32 1.0, %v160_v33  ;;  %v173_v37 = vmul.f32 %v277_v15, %v158_v35 }
 0x199   :  { %v162_v39 = vmul.f32 %v283_v31, %v161_v36  ;;  %267 = vmatmul.msk.f32.vlgmr.msra.gmra.mxu2 %vm126_vm1, %v173_v37  ;;  %175 = vst.msk [vmem:[#allocation8] sm:$0xff] %vm126_vm1, %v173_v37 }
 0x19b   :  { %v163_v41 = vadd.f32 %v283_v31, %v162_v39 }
 0x19d   :  { %v167_v43 = vsel %vm166_vm8, %v283_v31, %v163_v41 }
 0x19e   :  { %v172_v44 = vsel %vm169_vm9, %v171_v42, %v167_v43 }
 0x19f   :  { %v174_v45 = vmul.f32 %v279_v18, %v172_v44 }
 0x1a1   :  { %268 = vmatmul.msk.f32.vlgmr.msra.gmra.mxu3 %vm126_vm1, %v174_v45  ;;  %176 = vst.msk [vmem:[#allocation8 + $0x8] sm:$0xff] %vm126_vm1, %v174_v45 }
 0x1a2   :  { %237 = dma.vmem_to_hbm [thread:$0]  %s230_s30, 256, %s232_s7, [#allocation4], %s413_s23, %s413_s23, %s414_s24  }
 0x21c   :  { %v197_v46 = vpop.f32.mrf.mxu2 }
 0x21d   :  { %223 = vst.msk [vmem:[#allocation9] sm:$0xff] %vm73_vm0, %v197_v46 }
 0x224   :  { %v220_v47 = vpop.f32.mrf.mxu3 }
 0x225   :  { %224 = vst.msk [vmem:[#allocation9 + $0x8] sm:$0xff] %vm73_vm0, %v220_v47 }
 0x226   :  { %250 = dma.vmem_to_hbm [thread:$0]  %s243_s9, 256, %s245_s12, [#allocation10], %s413_s23, %s413_s23, %s414_s24  }
 0x227   :  { %408 = dma.done.wait [#allocation4], 256  }
 0x228   :  { %409 = vsyncadd [#allocation4], 4294967040 }
 0x229   :  { %410 = dma.done.wait [#allocation10], 256  }
 0x22a   :  { %411 = vsyncadd [#allocation10], 4294967040 }
 0x22b   :  { %259 = vsyncpa [#allocation3], 1 }
 0x22c   :  { %260 = vsyncpa [#allocation6], 1 }
 0x22d   :  { %261 = vsyncpa [#allocation4], 1 }
 0x22e   :  { %262 = vsyncpa [#allocation10], 1 }

</bundles_post_ra>
